<compile_context>
chip_gen: v7x
topology: tpu7x:2x2x1
jax: 0.10.0
libtpu: 0.0.40
codegen_flags: <defaults>
</compile_context>

<pallas_src>
import functools

import jax
import jax.numpy as jnp
from jax.experimental import pallas as pl
from jax.experimental.pallas import tpu as pltpu


# ----------------------------- small helpers ---------------------------------


def _cdiv(a, b):
    return -(-a // b)


def _round_up(x, m):
    return _cdiv(x, m) * m


def _sublanes(itemsize):
    # packed-dtype sublane granularity (f32: 8, bf16: 16, int8/fp8: 32)
    return {4: 8, 2: 16, 1: 32}.get(itemsize, 8)


def _vmem_capacity_bytes():
    try:
        return int(pltpu.get_tpu_info().vmem_capacity_bytes)
    except Exception:
        return 64 << 20  # conservative fallback (v7x per-core VMEM)


def _num_tensorcores():
    """Best-effort TensorCore count. Defaults to 1 so 1-TC chips never split a fitting step."""
    try:
        info = pltpu.get_tpu_info()
        for name in ("num_cores", "core_count", "num_tensorcores", "tensorcores_per_chip"):
            v = getattr(info, name, None)
            if v:
                return max(1, int(v))
    except Exception:
        pass
    try:
        v = getattr(jax.devices()[0], "num_cores", None)
        if v:
            return max(1, int(v))
    except Exception:
        pass
    return 1


# ------------------------- static pooling matrices ----------------------------


def _flat_pool_matrix(h, w, ho, wo, scale):
    """(h*w, ho*wo) avg-pool matrix (1/scale^2 at window positions, 0 elsewhere)."""
    idx = jnp.arange(h * w)
    r, c = idx // w, idx % w
    valid = (r < ho * scale) & (c < wo * scale)
    col = (r // scale) * wo + (c // scale)
    onehot = (col[:, None] == jnp.arange(ho * wo)[None, :]) & valid[:, None]
    return onehot.astype(jnp.float32) * (1.0 / float(scale * scale))


def _w_pool_matrices(w, wo, scale, pool_type):
    """W-window matrices: avg -> (1, w, wo) with 1/scale^2; max -> (scale, w, wo) selections."""
    c = jnp.arange(w)
    co = jnp.arange(wo)
    if pool_type == "avg":
        m = (c[:, None] // scale == co[None, :]) & (c[:, None] < wo * scale)
        return m.astype(jnp.float32)[None] * (1.0 / float(scale * scale))
    k = jnp.arange(scale)
    sel = c[None, :, None] == (co[None, None, :] * scale + k[:, None, None])
    return sel.astype(jnp.float32)


# --------------------------------- kernels ------------------------------------


def _flat_avg_kernel(x_ref, p_ref, o_ref):
    # Whole pool as one lane-dense MXU matmul: (tb, h*w) @ (h*w, ho*wo) -> (tb, ho*wo).
    o_ref[...] = jnp.dot(
        x_ref[...].astype(jnp.float32), p_ref[...],
        preferred_element_type=jnp.float32).astype(o_ref.dtype)


def _general_kernel(*refs, scale, pool_type, ho_t, wo, use_matmul_w, flatten_out):
    if use_matmul_w:
        x_ref, s_ref, o_ref = refs
    else:
        x_ref, o_ref = refs
        s_ref = None
    tb = x_ref.shape[0]
    w = x_ref.shape[2]

    # H-window reduction with sublane-strided ref loads (trailing rows ignored -> floor).
    # TODO(synk): for bf16/int8 inputs, load the tile once and reduce in-register (or via an
    # (ho_t, ht) MXU matrix) instead of per-offset strided loads on packed sublanes.
    if pool_type == "avg":
        red = x_ref[:, pl.ds(0, ho_t, stride=scale), :].astype(jnp.float32)
        for k in range(1, scale):
            red = red + x_ref[:, pl.ds(k, ho_t, stride=scale), :].astype(jnp.float32)
    else:
        red = x_ref[:, pl.ds(0, ho_t, stride=scale), :]
        for k in range(1, scale):
            red = jnp.maximum(red, x_ref[:, pl.ds(k, ho_t, stride=scale), :])

    if use_matmul_w:
        # W-window reduction on the MXU -- no lane-splitting reshape / relayout.
        red2 = red.astype(jnp.float32).reshape(tb * ho_t, w)
        res = jnp.dot(red2, s_ref[0], preferred_element_type=jnp.float32)
        if pool_type == "max":
            # Per-offset 0/1 selections combined with max (exact for f32 / bf16 values).
            for k in range(1, scale):
                res = jnp.maximum(
                    res, jnp.dot(red2, s_ref[k], preferred_element_type=jnp.float32))
        out = res.astype(o_ref.dtype)  # (tb*ho_t, wo)
        if flatten_out:
            o_ref[...] = out.reshape(tb, ho_t * wo)   # sublane->lane repack, gated by geometry
        else:
            o_ref[...] = out.reshape(tb, ho_t, wo)    # leading-dim split only (cheap)
    else:
        # Fallback for extremely wide planes (pooling matrix would be too large): keep the
        # previous reshape-based reduction (known-good lowering).
        w_use = wo * scale
        if pool_type == "avg":
            acc = jnp.sum(red[:, :, :w_use].reshape(tb, ho_t, wo, scale), axis=-1)
            out = (acc * (1.0 / float(scale * scale))).astype(o_ref.dtype)
        else:
            out = jnp.max(red[:, :, :w_use].reshape(tb, ho_t, wo, scale), axis=-1)
        if flatten_out:
            o_ref[...] = out.reshape(tb, ho_t * wo)
        else:
            o_ref[...] = out


# --------------------------------- wrapper ------------------------------------


def pool_down(x, scale, pool_type="avg", *, block_planes=None):
    """Equivalent of PoolDown_Module(scale, pool_type)(x) for NCHW input x."""
    if pool_type not in ("avg", "max"):
        raise NotImplementedError(pool_type)
    n, c, h, w = x.shape
    if h % scale != 0 or w % scale != 0:
        # Mirrors the PyTorch module's warning (trace-time only).
        print(f"[Warning][PoolDown_Module] {x.shape} not divisible by scale {scale}")
    ho, wo = h // scale, w // scale
    if ho == 0 or wo == 0:
        raise ValueError(f"Spatial dims {(h, w)} smaller than pooling scale {scale}")

    nc = n * c
    isz = jnp.dtype(x.dtype).itemsize
    subl = _sublanes(isz)
    cap = _vmem_capacity_bytes()
    budget = min(cap - (16 << 20), int(cap * 3) // 4)     # review #3: cap - fixed headroom
    budget = max(budget, cap // 2)
    vmem_limit = int(max(cap - (8 << 20), 32 << 20))
    num_cores = _num_tensorcores()

    w_pad = _round_up(w, 128)
    wo_pad = _round_up(wo, 128)

    # ---------------- small-plane avg fast path: one lane-dense MXU matmul --------------
    use_flat = (pool_type == "avg") and ((h * w) * (ho * wo) * 4 <= (2 << 20))
    if use_flat:
        hw_pad = _round_up(h * w, 128)
        howo_pad = _round_up(ho * wo, 128)
        per_plane = 2 * hw_pad * isz + 2 * howo_pad * isz + hw_pad * 4 + howo_pad * 4
        p_bytes = _round_up(h * w, 8) * howo_pad * 4
        avail = max(budget - p_bytes, per_plane)
        tb_max = max(1, avail // per_plane)
        if block_planes is not None:
            tb = min(nc, int(block_planes))
        else:
            tb = min(nc, max(8, (tb_max // 8) * 8))
            if num_cores > 1 and _cdiv(nc, tb) < num_cores and nc >= 16 * num_cores:
                tb = max(8, (_cdiv(nc, num_cores) // 8) * 8)   # balanced across cores
        if tb % 8 != 0 and tb != nc:                            # 2-D block alignment rule
            tb = min(nc, _round_up(tb, 8))
        tb = int(tb)

        xf = x.reshape(nc, h * w)
        P = _flat_pool_matrix(h, w, ho, wo, scale)
        cost = pl.CostEstimate(
            flops=int(2 * nc * h * w * ho * wo), transcendentals=0,
            bytes_accessed=int(nc * (h * w + ho * wo) * isz))
        out = pl.pallas_call(
            _flat_avg_kernel,
            out_shape=jax.ShapeDtypeStruct((nc, ho * wo), x.dtype),
            grid=(_cdiv(nc, tb),),
            in_specs=[pl.BlockSpec((tb, h * w), lambda i: (i, 0)),
                      pl.BlockSpec((h * w, ho * wo), lambda i: (0, 0))],
            out_specs=pl.BlockSpec((tb, ho * wo), lambda i: (i, 0)),
            compiler_params=pltpu.CompilerParams(
                dimension_semantics=("parallel",),
                vmem_limit_bytes=vmem_limit),
            cost_estimate=cost,
        )(xf, P)
        return out.reshape(n, c, ho, wo)

    # ----------------------------- general streaming path -------------------------------
    ns = 1 if pool_type == "avg" else scale
    s_bytes = ns * _round_up(w, 8) * wo_pad * 4
    use_matmul_w = s_bytes <= (8 << 20)

    def per_plane_bytes(ht_, hot_):
        # review #4: account for physical (sublane, lane) tile padding, double buffering.
        in_b = _round_up(ht_, subl) * w_pad * isz
        out_b = _round_up(hot_, subl) * wo_pad * isz
        acc_b = _round_up(hot_, 8) * w_pad * 4          # f32 H-reduced value
        res_b = 2 * _round_up(hot_, 8) * wo_pad * 4     # matmul result (+ one live temp)
        return 2 * in_b + 2 * out_b + acc_b + res_b

    avail = budget - (s_bytes if use_matmul_w else 0)
    avail = max(avail, budget // 2)
    full_plane = per_plane_bytes(h, ho)

    if full_plane <= avail:
        h_tiled = False
        ho_t, ht = ho, h
        tb_max = max(1, avail // full_plane)
        if block_planes is not None:
            tb = min(nc, int(block_planes))
        else:
            tb = min(nc, tb_max)
            if num_cores > 1 and nc >= 2 * num_cores:
                # review #5/#6: split only on multi-core parts, into balanced steps.
                steps = _round_up(max(_cdiv(nc, tb), num_cores), num_cores)
                steps = min(steps, nc)
                tb = _cdiv(nc, steps)
    else:
        # review #7: a single plane exceeds the VMEM budget -> independent H-tile grid axis.
        h_tiled = True
        tb = 1
        unit_cost = per_plane_bytes(8 * scale, 8)
        n_units = max(1, avail // unit_cost)
        ho_t = min(_round_up(ho, 8), 8 * n_units)
        ho_t = max(8, (ho_t // 8) * 8)
        ht = ho_t * scale
    tb, ho_t, ht = int(tb), int(ho_t), int(ht)

    # review #2: flatten only when it actually removes masked narrow stores.
    flatten_out = ((not h_tiled) and wo < 128 and ho * wo >= 128
                   and (tb % 8 == 0 or tb == nc))

    xf = x.reshape(nc, h, w)
    grid = (_cdiv(nc, tb), _cdiv(ho, ho_t))
    in_specs = [pl.BlockSpec((tb, ht, w), lambda i, j: (i, j, 0))]
    call_args = [xf]
    if use_matmul_w:
        S = _w_pool_matrices(w, wo, scale, pool_type)
        in_specs.append(pl.BlockSpec((ns, w, wo), lambda i, j: (0, 0, 0)))
        call_args.append(S)

    if flatten_out:
        out_shape = jax.ShapeDtypeStruct((nc, ho * wo), x.dtype)
        out_spec = pl.BlockSpec((tb, ho_t * wo), lambda i, j: (i, 0))
    else:
        out_shape = jax.ShapeDtypeStruct((nc, ho, wo), x.dtype)
        out_spec = pl.BlockSpec((tb, ho_t, wo), lambda i, j: (i, j, 0))

    kernel = functools.partial(
        _general_kernel, scale=scale, pool_type=pool_type, ho_t=ho_t, wo=wo,
        use_matmul_w=use_matmul_w, flatten_out=flatten_out)

    flops = nc * ho * wo * scale * scale
    if use_matmul_w:
        flops += 2 * nc * ho * w * wo * ns
    cost = pl.CostEstimate(flops=int(flops), transcendentals=0,
                           bytes_accessed=int(nc * (h * w + ho * wo) * isz))

    out = pl.pallas_call(
        kernel,
        out_shape=out_shape,
        grid=grid,
        in_specs=in_specs,
        out_specs=out_spec,
        compiler_params=pltpu.CompilerParams(
            dimension_semantics=("parallel", "parallel"),
            vmem_limit_bytes=vmem_limit),
        cost_estimate=cost,
    )(*call_args)
    return out.reshape(n, c, ho, wo)


# ----------------------------------- tests ------------------------------------


if __name__ == "__main__":
    key = jax.random.PRNGKey(0)

    # 1) Module-implied NCHW shape, scale=2: avg (flat MXU fast path) + max (general path).
    scale = 2
    x = jax.random.normal(key, (2, 4, 16, 16), dtype=jnp.float32)
    y_avg = jax.block_until_ready(pool_down(x, scale, pool_type="avg"))
    y_max = jax.block_until_ready(pool_down(x, scale, pool_type="max"))
    xr = x.reshape(2, 4, 8, 2, 8, 2)
    assert y_avg.shape == (2, 4, 8, 8) and y_avg.dtype == x.dtype
    assert y_max.shape == (2, 4, 8, 8) and y_max.dtype == x.dtype
    assert jnp.allclose(y_avg, xr.mean(axis=(3, 5)), atol=1e-5, rtol=1e-5)
    assert jnp.allclose(y_max, xr.max(axis=(3, 5)), atol=1e-5, rtol=1e-5)

    # 2) Wider plane, scale=4: general path with MXU W-pool and lane-dense flattened output.
    x2 = jax.random.normal(jax.random.PRNGKey(1), (2, 16, 32, 128), dtype=jnp.float32)
    y2 = jax.block_until_ready(pool_down(x2, 4, pool_type="avg"))
    xr2 = x2.reshape(2, 16, 8, 4, 32, 4)
    assert y2.shape == (2, 16, 8, 32) and y2.dtype == x2.dtype
    assert jnp.allclose(y2, xr2.mean(axis=(3, 5)), atol=1e-5, rtol=1e-5)

    # 3) Partial last plane block (nc % tb != 0): locks in padded-read / clipped-write path.
    x3 = jax.random.normal(jax.random.PRNGKey(2), (3, 2, 16, 16), dtype=jnp.float32)
    y3 = jax.block_until_ready(pool_down(x3, 2, pool_type="max", block_planes=4))
    xr3 = x3.reshape(3, 2, 8, 2, 8, 2)
    assert y3.shape == (3, 2, 8, 8) and y3.dtype == x3.dtype
    assert jnp.allclose(y3, xr3.max(axis=(3, 5)), atol=1e-5, rtol=1e-5)

    print("KERNEL_OK")
</pallas_src>

<mosaic_0001>
module attributes {stable_mosaic.version = 11 : i64} {
  func.func @_flat_avg_kernel(%arg0: i32, %arg1: memref<8x256xf32, #tpu.memory_space<vmem>>, %arg2: memref<256x64xf32, #tpu.memory_space<vmem>>, %arg3: memref<8x64xf32, #tpu.memory_space<vmem>>) attributes {dimension_semantics = [#tpu.dimension_semantics<parallel>], iteration_bounds = array<i64: 1>, scalar_prefetch = 0 : i64, scratch_operands = 0 : i64, tpu.core_type = #tpu.core_type<tc>, window_params = [{transform_indices = @transform_0, window_bounds = array<i64: 8, 256>}, {pipeline_mode = #tpu.pipeline_mode<synchronous>, transform_indices = @transform_1, window_bounds = array<i64: 256, 64>}, {transform_indices = @transform_2, window_bounds = array<i64: 8, 64>}]} {
    %c0 = arith.constant 0 : index
    %c0_0 = arith.constant 0 : index
    %0 = vector.load %arg1[%c0, %c0_0] : memref<8x256xf32, #tpu.memory_space<vmem>>, vector<8x256xf32>
    %c0_1 = arith.constant 0 : index
    %c0_2 = arith.constant 0 : index
    %1 = vector.load %arg2[%c0_1, %c0_2] : memref<256x64xf32, #tpu.memory_space<vmem>>, vector<256x64xf32>
    %cst = arith.constant dense<0.000000e+00> : vector<8x64xf32>
    %2 = tpu.matmul %0, %1, %cst {dimension_numbers = #tpu.dot_dimension_numbers<[1], [0], [0], [1], [0, 0, 1, 1], [], []>} : vector<8x256xf32>, vector<256x64xf32>, vector<8x64xf32> -> vector<8x64xf32>
    %c0_3 = arith.constant 0 : index
    %c0_4 = arith.constant 0 : index
    %3 = vector.load %arg3[%c0_3, %c0_4] : memref<8x64xf32, #tpu.memory_space<vmem>>, vector<8x64xf32>
    tpu.vector_store %arg3[%c0_3, %c0_4], %2 {strides = array<i32>} : memref<8x64xf32, #tpu.memory_space<vmem>>, vector<8x64xf32>,
    return
  }
  func.func @transform_0(%arg0: i32) -> (i32, i32) {
    %c0_i32 = arith.constant 0 : i32
    %c0_i32_0 = arith.constant 0 : i32
    return %arg0, %c0_i32 : i32, i32
  }
  func.func @transform_1(%arg0: i32) -> (i32, i32) {
    %c0_i32 = arith.constant 0 : i32
    %c0_i32_0 = arith.constant 0 : i32
    %c0_i32_1 = arith.constant 0 : i32
    return %c0_i32, %c0_i32_0 : i32, i32
  }
  func.func @transform_2(%arg0: i32) -> (i32, i32) {
    %c0_i32 = arith.constant 0 : i32
    %c0_i32_0 = arith.constant 0 : i32
    return %arg0, %c0_i32 : i32, i32
  }
}

</mosaic_0001>

<bundles_post_ra>
// kernel: tpu_custom_call.1
= control target key start
LH: loop header
LB: loop body
LE: loop exit
PB: predicated region body
PF: predicated region fallthrough
CT: control target
= control target key end

     0   :  { %s354_s0 = inlined_call_operand.vmem [shape: f32[8,256], index: 0, kind: input, shape index: {}]   ;;  %s355_s1 = inlined_call_operand.vmem [shape: f32[256,64], index: 1, kind: input, shape index: {}]   ;;  %s356_s2 = inlined_call_operand.hbm [shape: f32[8,64], index: 2, kind: output, shape index: {}]  }
   0x1   :  { %v30_v0 = vld [vmem:[%s355_s1 + $0x80] sm:$0xff]  ;;  %v31_v1 = vld [vmem:[%s355_s1 + $0x88] sm:$0xff]  ;;  %v32_v5 = vld [vmem:[%s355_s1 + $0x90] sm:$0xff] }
   0x2   :  { %v14_v2 = vld [vmem:[%s355_s1] sm:$0xff]  ;;  %v167_v3 = vpack.c.bf16 %v31_v1, %v30_v0  ;;  %v15_v4 = vld [vmem:[%s355_s1 + $0x8] sm:$0xff]  ;;  %v33_v6 = vld [vmem:[%s355_s1 + $0x98] sm:$0xff] }
   0x3   :  { %v169_v7 = vpack.c.bf16 %v15_v4, %v14_v2  ;;  %v171_v8 = vpack.c.bf16 %v33_v6, %v32_v5  ;;  %v16_v9 = vld [vmem:[%s355_s1 + $0x10] sm:$0xff]  ;;  %v17_v10 = vld [vmem:[%s355_s1 + $0x18] sm:$0xff]  ;;  %v34_v11 = vld [vmem:[%s355_s1 + $0xa0] sm:$0xff] }
   0x4   :  { %168 = vmatprep.subr.bf16.mxu0 %v167_v3  ;;  %v35_v12 = vld [vmem:[%s355_s1 + $0xa8] sm:$0xff]  ;;  %v173_v13 = vpack.c.bf16 %v17_v10, %v16_v9  ;;  %v18_v15 = vld [vmem:[%s355_s1 + $0x20] sm:$0xff]  ;;  %v36_v17 = vld [vmem:[%s355_s1 + $0xb0] sm:$0xff] }
   0x5   :  { %170 = vmatpush3.bf16.msra.mxu0 %v169_v7  ;;  %v175_v14 = vpack.c.bf16 %v35_v12, %v34_v11  ;;  %v19_v16 = vld [vmem:[%s355_s1 + $0x28] sm:$0xff]  ;;  %v37_v18 = vld [vmem:[%s355_s1 + $0xb8] sm:$0xff]  ;;  %v20_v21 = vld [vmem:[%s355_s1 + $0x30] sm:$0xff] }
   0x6   :  { %172 = vmatprep.subr.bf16.mxu0 %v171_v8  ;;  %v177_v19 = vpack.c.bf16 %v19_v16, %v18_v15  ;;  %v179_v20 = vpack.c.bf16 %v37_v18, %v36_v17  ;;  %v21_v22 = vld [vmem:[%s355_s1 + $0x38] sm:$0xff]  ;;  %v38_v23 = vld [vmem:[%s355_s1 + $0xc0] sm:$0xff]  ;;  %v39_v24 = vld [vmem:[%s355_s1 + $0xc8] sm:$0xff] }
   0x7   :  { %v13_v25 = vld [vmem:[%s354_s0 + $0x8] sm:$0xff] }
   0x8   :  { %110 = vmatprep.mubr.f32.mxu0 %v13_v25 }
   0x9   :  { %174 = vmatpush3.bf16.msra.mxu0 %v173_v13 }
   0xa   :  { %176 = vmatprep.subr.bf16.mxu0 %v175_v14 }
   0xb   :  { %7 = vsyncpa [#allocation3], 0  ;;  %v181_v26 = vpack.c.bf16 %v21_v22, %v20_v21  ;;  %v183_v27 = vpack.c.bf16 %v39_v24, %v38_v23  ;;  %v22_v28 = vld [vmem:[%s355_s1 + $0x40] sm:$0xff]  ;;  %v23_v29 = vld [vmem:[%s355_s1 + $0x48] sm:$0xff]  ;;  %s224_s21 = smov [#allocation2]   ;;  %vm116_vm0 = vcmask 523264  }
   0xc   :  { %v40_v30 = vld [vmem:[%s355_s1 + $0xd0] sm:$0xff]  ;;  %v41_v31 = vld [vmem:[%s355_s1 + $0xd8] sm:$0xff]  ;;  %v185_v32 = vpack.c.bf16 %v23_v29, %v22_v28  ;;  %v42_v36 = vld [vmem:[%s355_s1 + $0xe0] sm:$0xff]  ;;  %s124_s22 = sshll.u32 %s224_s21, 4  ;;  %s125_s22 = int_to_ptr.vmem [resolvable:$true] %s124_s22 }
   0xd   :  { %178 = vmatpush3.bf16.msra.mxu0 %v177_v19  ;;  %v187_v33 = vpack.c.bf16 %v41_v31, %v40_v30  ;;  %v24_v34 = vld [vmem:[%s355_s1 + $0x50] sm:$0xff]  ;;  %v25_v35 = vld [vmem:[%s355_s1 + $0x58] sm:$0xff]  ;;  %v43_v37 = vld [vmem:[%s355_s1 + $0xe8] sm:$0xff]  ;;  %s200_s23 = scalar_lea.vmem %s125_s22, 128  ;;  %p205_p1 = scmp.lt.s32.totalorder %s125_s22, %s125_s22 }
   0xe   :  { %180 = vmatprep.subr.bf16.mxu0 %v179_v20  ;;  %v189_v38 = vpack.c.bf16 %v25_v35, %v24_v34  ;;  %v191_v39 = vpack.c.bf16 %v43_v37, %v42_v36  ;;  %v26_v40 = vld [vmem:[%s355_s1 + $0x60] sm:$0xff]  ;;  %v27_v41 = vld [vmem:[%s355_s1 + $0x68] sm:$0xff]  ;;  %v44_v42 = vld [vmem:[%s355_s1 + $0xf0] sm:$0xff]  ;;  %p201_p0 = scmp.ne.s32.totalorder %s125_s22, %s200_s23  ;;  %p206_p2 = scmp.lt.s32.totalorder %s200_s23, %s200_s23 }
   0xf   :  { %v45_v43 = vld [vmem:[%s355_s1 + $0xf8] sm:$0xff]  ;;  %v193_v44 = vpack.c.bf16 %v27_v41, %v26_v40  ;;  %v28_v46 = vld [vmem:[%s355_s1 + $0x70] sm:$0xff]  ;;  %v12_v49 = vld [vmem:[%s354_s0] sm:$0xff] }
  0x10   :  { %v195_v45 = vpack.c.bf16 %v45_v43, %v44_v42  ;;  %v29_v47 = vld [vmem:[%s355_s1 + $0x78] sm:$0xff]  ;;  %p207_p3 = por %p206_p2, %p205_p1 }
  0x11   :  { %182 = vmatpush3.bf16.msra.mxu0 %v181_v26  ;;  %v197_v48 = vpack.c.bf16 %v29_v47, %v28_v46 }
  0x12   :  { %184 = vmatprep.subr.bf16.mxu0 %v183_v27  ;;  %p208_p4 = pnand %p207_p3, %p201_p0 }
  0x15   :  { %186 = vmatpush3.bf16.msra.mxu0 %v185_v32 }
  0x16   :  { %188 = vmatprep.subr.bf16.mxu0 %v187_v33 }
  0x19   :  { %190 = vmatpush3.bf16.msra.mxu0 %v189_v38 }
  0x1a   :  { %192 = vmatprep.subr.bf16.mxu0 %v191_v39 }
  0x1d   :  { %194 = vmatpush3.bf16.msra.mxu0 %v193_v44 }
  0x1e   :  { %196 = vmatprep.subr.bf16.mxu0 %v195_v45 }
  0x21   :  { %198 = vmatpush3.bf16.msra.mxu0 %v197_v48 }
  0x24   :  { %111 = vmatmul.mubr.f32.vlgmr.msra.gmra.mrb[0].mxu0 %v12_v49 }
  0xf7   :  { %v164_v50 = vpop.f32.mrb[0].mxu0 }
  0xf8   :  { %v165_v51 = vpop.f32.mrb[1].mxu0 }
  0xf9   :  { %v166_v52 = vadd.f32 %v165_v51, %v164_v50 }
  0xfb   :  { %117 = vst.msk [vmem:[#allocation2] sm:$0xff] %vm116_vm0, %v166_v52 }
  0xfc   :  { %211 = shalt.err (!%p208_p4)
}
  0xfd   :  { %s212_s0 = scalar_lea.hbm %s356_s2, 128 }
  0xfe   :  { %p213_p5 = scmp.ne.s32.totalorder %s356_s2, %s212_s0  ;;  %p216_p6 = scmp.lt.u32.totalorder %s212_s0, %s356_s2 }
 0x100   :  { %p218_p7 = pnand %p216_p6, %p213_p5 }
 0x102   :  { %221 = shalt.err (!%p218_p7)
}
 0x103   :  { %127 = dma.vmem_to_hbm [thread:$0]  %s125_s22, 128, %s356_s2, [#allocation3]  }
 0x104   :  { %222 = dma.done.wait [#allocation3], 128  }
 0x105   :  { %223 = vsyncadd [#allocation3], 4294967168 }
 0x106   :  { %131 = vsyncpa [#allocation3], 1 }

</bundles_post_ra>
